<compile_context>
chip_gen: v5e
topology: v5e:2x2
jax: 0.10.0
libtpu: 0.0.40
codegen_flags: <defaults>
</compile_context>

<pallas_src>
from functools import partial

import jax
import jax.numpy as jnp
from jax.experimental import pallas as pl
from jax.experimental.pallas import tpu as pltpu


def _round_up(x, m):
    return ((x + m - 1) // m) * m


def _tpw_kernel(xin_ref, w2_ref, o_ref, *, num_elements, num_edge_feats, matmul_dtype):
    # xin_ref: [tb, A+E]  concatenated (node_attrs | edge_feats) tile
    # w2_ref : [A*E, K]   flattened weights (VMEM-resident, already matmul_dtype)
    # o_ref  : [tb, K]    output tile (unpadded K)
    xin = xin_ref[...].astype(jnp.float32)
    na = xin[:, :num_elements]                                   # [tb, A]
    ef = xin[:, num_elements:num_elements + num_edge_feats]      # [tb, E]

    # Fused per-row outer product: X[:, a*E + e] = na[:, a] * ef[:, e].
    # A is small & static -> unrolled VPU broadcast-multiplies + one lane concat.
    pieces = [na[:, a:a + 1] * ef for a in range(num_elements)]
    x = jnp.concatenate(pieces, axis=-1)                         # [tb, A*E]

    # Single MXU push per tile; f32 accumulation regardless of operand dtype.
    out = jnp.dot(
        x.astype(matmul_dtype),
        w2_ref[...],
        preferred_element_type=jnp.float32,
    )
    o_ref[...] = out.astype(o_ref.dtype)


def tensor_product_weights_block(
    node_attrs,                  # [B, A]
    edge_feats,                  # [B, E]
    weights,                     # [A, E, K]
    *,
    tb=8192,                     # batch tile (rows / grid step)
    matmul_dtype=jnp.float32,    # jnp.bfloat16 usable on v6e/v7x (f32 accumulation)
    vmem_limit_bytes=None,       # only needed when raising tb far past the default
):
    """out[b,k] = sum_{a,e} edge_feats[b,e] * node_attrs[b,a] * weights[a,e,k]"""
    B, A = node_attrs.shape
    B2, E = edge_feats.shape
    A2, E2, K = weights.shape
    assert B == B2 and A == A2 and E == E2

    # Host-side prep:
    #   * flatten weights to the 2-D matmul operand and cast once to the matmul
    #     dtype (avoids a per-iteration cast of the resident block).
    #   * concatenate the two row-wise inputs -> one DMA stream per grid step.
    w2 = weights.reshape(A * E, K).astype(matmul_dtype)
    x_in = jnp.concatenate(
        [node_attrs.astype(edge_feats.dtype), edge_feats], axis=-1
    )                                                            # [B, A+E]

    # Batch tile selection: clamp to B, round to a sublane multiple of 8, and
    # keep >= 2 grid steps when the batch allows it (v7x megacore sharding).
    tb_eff = max(8, _round_up(min(tb, B), 8))
    if B >= 16 and pl.cdiv(B, tb_eff) < 2:
        tb_eff = _round_up(pl.cdiv(B, 2), 8)
    grid = (pl.cdiv(B, tb_eff),)

    cp_kwargs = dict(dimension_semantics=("parallel",))
    if vmem_limit_bytes is not None:
        cp_kwargs["vmem_limit_bytes"] = vmem_limit_bytes

    out = pl.pallas_call(
        partial(
            _tpw_kernel,
            num_elements=A,
            num_edge_feats=E,
            matmul_dtype=matmul_dtype,
        ),
        out_shape=jax.ShapeDtypeStruct((B, K), edge_feats.dtype),
        grid_spec=pltpu.PrefetchScalarGridSpec(
            num_scalar_prefetch=0,
            grid=grid,
            in_specs=[
                pl.BlockSpec((tb_eff, A + E), lambda i: (i, 0)),   # fused inputs tile
                pl.BlockSpec((A * E, K), lambda i: (0, 0)),        # resident weights
            ],
            out_specs=pl.BlockSpec((tb_eff, K), lambda i: (i, 0)), # unpadded K output
        ),
        compiler_params=pltpu.CompilerParams(**cp_kwargs),
    )(x_in, w2)

    return out


def init_weights(key, num_elements, num_edge_feats, num_feats_out, dtype=jnp.float32):
    # torch.nn.init.xavier_uniform_ on a 3-D tensor (A, E, K):
    #   fan_in = E * K, fan_out = A * K, bound = sqrt(6 / (fan_in + fan_out))
    fan_in = num_edge_feats * num_feats_out
    fan_out = num_elements * num_feats_out
    bound = (6.0 / (fan_in + fan_out)) ** 0.5
    return jax.random.uniform(
        key,
        (num_elements, num_edge_feats, num_feats_out),
        dtype=dtype,
        minval=-bound,
        maxval=bound,
    )


if __name__ == "__main__":
    # Small shapes consistent with the module:
    #   num_elements=4, num_edge_feats=8, num_feats_out=32
    num_elements, num_edge_feats, num_feats_out = 4, 8, 32

    key = jax.random.PRNGKey(0)
    k_w, k_attr, k_edge, k_attr2, k_edge2 = jax.random.split(key, 5)

    weights = init_weights(k_w, num_elements, num_edge_feats, num_feats_out)

    # --- aligned small batch ---
    batch = 16
    elem_ids = jax.random.randint(k_attr, (batch,), 0, num_elements)
    node_attrs = jax.nn.one_hot(elem_ids, num_elements, dtype=jnp.float32)   # [B, A]
    edge_feats = jax.random.normal(k_edge, (batch, num_edge_feats), jnp.float32)

    out = tensor_product_weights_block(node_attrs, edge_feats, weights)
    out = jax.block_until_ready(out)

    ref = jnp.einsum("be,ba,aek->bk", edge_feats, node_attrs, weights)
    assert out.shape == (batch, num_feats_out)
    assert jnp.allclose(out, ref, atol=1e-4, rtol=1e-4)

    # --- ragged batch (not a multiple of the tile): cdiv grid + masked tail ---
    batch_r = 50
    elem_ids_r = jax.random.randint(k_attr2, (batch_r,), 0, num_elements)
    node_attrs_r = jax.nn.one_hot(elem_ids_r, num_elements, dtype=jnp.float32)
    edge_feats_r = jax.random.normal(k_edge2, (batch_r, num_edge_feats), jnp.float32)

    out_r = tensor_product_weights_block(node_attrs_r, edge_feats_r, weights, tb=32)
    out_r = jax.block_until_ready(out_r)

    ref_r = jnp.einsum("be,ba,aek->bk", edge_feats_r, node_attrs_r, weights)
    assert out_r.shape == (batch_r, num_feats_out)
    assert jnp.allclose(out_r, ref_r, atol=1e-4, rtol=1e-4)

    print("KERNEL_OK")
</pallas_src>

<mosaic_0001>
module attributes {stable_mosaic.version = 11 : i64} {
  func.func @_tpw_kernel(%arg0: i32, %arg1: memref<8x12xf32, #tpu.memory_space<vmem>>, %arg2: memref<32x32xf32, #tpu.memory_space<vmem>>, %arg3: memref<8x32xf32, #tpu.memory_space<vmem>>) attributes {dimension_semantics = [#tpu.dimension_semantics<parallel>], iteration_bounds = array<i64: 2>, scalar_prefetch = 0 : i64, scratch_operands = 0 : i64, tpu.core_type = #tpu.core_type<tc>, window_params = [{transform_indices = @transform_0, window_bounds = array<i64: 8, 12>}, {pipeline_mode = #tpu.pipeline_mode<synchronous>, transform_indices = @transform_1, window_bounds = array<i64: 32, 32>}, {transform_indices = @transform_2, window_bounds = array<i64: 8, 32>}]} {
    %c0 = arith.constant 0 : index
    %c0_0 = arith.constant 0 : index
    %0 = vector.load %arg1[%c0, %c0_0] : memref<8x12xf32, #tpu.memory_space<vmem>>, vector<8x12xf32>
    %1 = vector.extract_strided_slice %0 {offsets = [0, 0], sizes = [8, 4], strides = [1, 1]} : vector<8x12xf32> to vector<8x4xf32>
    %2 = vector.extract_strided_slice %0 {offsets = [0, 4], sizes = [8, 8], strides = [1, 1]} : vector<8x12xf32> to vector<8x8xf32>
    %3 = vector.extract_strided_slice %1 {offsets = [0, 0], sizes = [8, 1], strides = [1, 1]} : vector<8x4xf32> to vector<8x1xf32>
    %4 = vector.broadcast %3 : vector<8x1xf32> to vector<8x8xf32>
    %5 = arith.mulf %4, %2 : vector<8x8xf32>
    %6 = vector.extract_strided_slice %1 {offsets = [0, 1], sizes = [8, 1], strides = [1, 1]} : vector<8x4xf32> to vector<8x1xf32>
    %7 = vector.broadcast %6 : vector<8x1xf32> to vector<8x8xf32>
    %8 = arith.mulf %7, %2 : vector<8x8xf32>
    %9 = vector.extract_strided_slice %1 {offsets = [0, 2], sizes = [8, 1], strides = [1, 1]} : vector<8x4xf32> to vector<8x1xf32>
    %10 = vector.broadcast %9 : vector<8x1xf32> to vector<8x8xf32>
    %11 = arith.mulf %10, %2 : vector<8x8xf32>
    %12 = vector.extract_strided_slice %1 {offsets = [0, 3], sizes = [8, 1], strides = [1, 1]} : vector<8x4xf32> to vector<8x1xf32>
    %13 = vector.broadcast %12 : vector<8x1xf32> to vector<8x8xf32>
    %14 = arith.mulf %13, %2 : vector<8x8xf32>
    %15 = tpu.concatenate %5, %8, %11, %14 in 1 : vector<8x8xf32>, vector<8x8xf32>, vector<8x8xf32>, vector<8x8xf32> -> vector<8x32xf32>
    %c0_1 = arith.constant 0 : index
    %c0_2 = arith.constant 0 : index
    %16 = vector.load %arg2[%c0_1, %c0_2] : memref<32x32xf32, #tpu.memory_space<vmem>>, vector<32x32xf32>
    %cst = arith.constant dense<0.000000e+00> : vector<8x32xf32>
    %17 = tpu.matmul %15, %16, %cst {dimension_numbers = #tpu.dot_dimension_numbers<[1], [0], [0], [1], [0, 0, 1, 1], [], []>} : vector<8x32xf32>, vector<32x32xf32>, vector<8x32xf32> -> vector<8x32xf32>
    %c0_3 = arith.constant 0 : index
    %c0_4 = arith.constant 0 : index
    %18 = vector.load %arg3[%c0_3, %c0_4] : memref<8x32xf32, #tpu.memory_space<vmem>>, vector<8x32xf32>
    tpu.vector_store %arg3[%c0_3, %c0_4], %17 {strides = array<i32>} : memref<8x32xf32, #tpu.memory_space<vmem>>, vector<8x32xf32>,
    return
  }
  func.func @transform_0(%arg0: i32) -> (i32, i32) {
    %c0_i32 = arith.constant 0 : i32
    %c0_i32_0 = arith.constant 0 : i32
    return %arg0, %c0_i32 : i32, i32
  }
  func.func @transform_1(%arg0: i32) -> (i32, i32) {
    %c0_i32 = arith.constant 0 : i32
    %c0_i32_0 = arith.constant 0 : i32
    %c0_i32_1 = arith.constant 0 : i32
    return %c0_i32, %c0_i32_0 : i32, i32
  }
  func.func @transform_2(%arg0: i32) -> (i32, i32) {
    %c0_i32 = arith.constant 0 : i32
    %c0_i32_0 = arith.constant 0 : i32
    return %arg0, %c0_i32 : i32, i32
  }
}

</mosaic_0001>

<bundles_post_ra>
// kernel: tpu_custom_call.1
= control target key start
LH: loop header
LB: loop body
LE: loop exit
PB: predicated region body
PF: predicated region fallthrough
CT: control target
= control target key end

     0   :  { %7 = vsyncpa [#allocation3], 0  ;;  %s732_s0 = inlined_call_operand.hbm [shape: f32[16,12], index: 0, kind: input, shape index: {}]   ;;  %s733_s1 = inlined_call_operand.hbm [shape: f32[32,32], index: 1, kind: input, shape index: {}]   ;;  %s734_s2 = inlined_call_operand.hbm [shape: f32[16,32], index: 2, kind: output, shape index: {}]  }
   0x1   :  { %9 = vsyncpa [#allocation3 + $0x1], 0 }
   0x2   :  { %10 = vsyncpa [#allocation6], 0 }
   0x3   :  { %11 = vsyncpa [#allocation4], 0 }
   0x4   :  { %13 = vsyncpa [#allocation4 + $0x1], 0  ;;  %s592_s9 = smov 0   ;;  %s594_s10 = smov 0  }
   0x5   :  { %s596_s11 = smov 0   ;;  %s598_s12 = smov 0  }
   0x6 LB: > { %s108_s15 = sshll.u32 %s733_s1, 4  ;;  %s616_s16 = sadd.s32 4294967295, %s564_s12   ;;  %s564_s12 = sphi %s598_s12, %s744_s12   ;;  %s560_s11 = sphi %s596_s11, %s743_s11   ;;  %s556_s10 = sphi %s594_s10, %s742_s10   ;;  %s552_s9 = sphi %s592_s9, %s741_s9   ;;  %s109_s15 = int_to_ptr.hbm [resolvable:$true] %s108_s15 }
   0x7   : > { %p348_p0 = scmp.ge.s32.totalorder %s564_s12, 1  ;;  %p40_p1 = scmp.eq.s32.totalorder %s616_s16, 0 }
   0x8   : > { %p97_p2 = scmp.lt.s32.totalorder %s564_s12, 3  ;;  %s566_s18 = smov [#allocation5]  }
   0x9   : > { %s110_s19 = sshll.u32 %s566_s18, 4  ;;  %s567_s20 = smov 128   ;;  %s111_s19 = int_to_ptr.vmem [resolvable:$true] %s110_s19 }
   0xa   : > { %p621_p3 = pnand %p348_p0, %p97_p2  ;;  %s568_s21 = smov 8  }
   0xb   : > { %s347_s22 = sadd.s32 4294967294, %s564_s12   ;;  %s632_s23 = sadd.s32 1, %s564_s12  }
   0xc   : > { %p370_p4 = pneg %p621_p3  ;;  %s26_s24 = sadd.s32 1, %s560_s11 }
   0xd   : > { %s23_s25 = ssub.s32 %s564_s12, %s632_s23  ;;  %p33_p7 = scmp.ne.s32.totalorder %s560_s11, %s556_s10 }
   0xe   : > { %p371_p6 = pnand %p370_p4, %p40_p1  ;;  %p24_p8 = scmp.eq.s32.totalorder %s23_s25, 0 }
   0xf   : > { %p34_p9 = scmp.eq.s32.totalorder %s564_s12, 0  ;;  %p39_p10 = scmp.ne.s32.totalorder %s556_s10, %s552_s9 }
  0x10   : > { %373 = dma.hbm_to_vmem [thread:$0]  (!%p371_p6), %s109_s15, 512, %s111_s19, [#allocation6], %s567_s20, %s567_s20, %s568_s21  }
  0x11   : > { %p84_p11 = scmp.eq.s32.totalorder %s616_s16, 1  ;;  %p648_p12 = por %p40_p1, %p39_p10 }
  0x12   : > { %s644_s26 = scalar_select %p24_p8, %s560_s11, %s26_s24  }
  0x13   : > { %p652_p13 = por %p84_p11, %p33_p7  ;;  %p90_p0 = scmp.eq.s32.totalorder %s347_s22, 1 }
  0x14   : > { %p35_p2 = por %p34_p9, %p33_p7  ;;  %s124_s29 = sand.u32 1, %s560_s11  }
  0x15   : > { %p657_p4 = por %p90_p0, %p39_p10  ;;  %p383_p6 = scmp.lt.s32.totalorder %s564_s12, 2 }
  0x16   : > { %s351_s3 = sshll.u32 %s124_s29, 3  ;;  %s352_s4 = sshll.u32 %s564_s12, 3 }
  0x17   : > { %s132_s7 = scalar_lea.hbm %s732_s0, %s352_s4  ;;  %s128_s13 = scalar_lea.vmem [#allocation2], %s351_s3 }
  0x18   : > { %s134_s8 = sshll.u32 %s132_s7, 4  ;;  %s136_s14 = sshll.u32 %s128_s13, 4  ;;  %s135_s8 = int_to_ptr.hbm [resolvable:$true] %s134_s8  ;;  %s137_s14 = int_to_ptr.vmem [resolvable:$true] %s136_s14 }
  0x19   : > { %p666_p8 = pnand %p383_p6, %p35_p2  ;;  %s125_s18 = scalar_lea.sflag [#allocation3], %s124_s29 }
  0x1a   : > { %s464_s19 = sshra.s32 %s135_s8, 4  ;;  %s471_s24 = scalar_lea.hbm %s732_s0, 16  ;;  %s465_s19 = int_to_ptr.hbm [resolvable:$true] %s464_s19 }
  0x1b   : > { %s466_s20 = scalar_lea.hbm %s465_s19, 8  ;;  %p468_p9 = pneg %p666_p8 }
  0x1c   : > { %p467_p7 = scmp.ne.s32.totalorder %s465_s19, %s466_s20  ;;  %p472_p0 = scmp.lt.s32.totalorder %s465_s19, %s732_s0 }
  0x1d   : > { %p473_p2 = scmp.lt.s32.totalorder %s471_s24, %s466_s20 }
  0x1e   : > { %p469_p10 = pnand %p468_p9, %p467_p7 }
  0x1f   : > { %p474_p6 = por %p473_p2, %p472_p0 }
  0x20   : > { %p470_p11 = pneg %p469_p10 }
  0x22   : > { %p475_p5 = pnand %p474_p6, %p470_p11 }
  0x24   : > { %478 = shalt.err (!%p475_p5)
}
  0x25   : > { %377 = dma.hbm_to_vmem [thread:$0]  (!%p666_p8), %s135_s8, 128, %s137_s14, %s125_s18  }
  0x26   : > { %145 = sbr.rel (%p621_p3) target bundleno = 411 (0x19b), region = 28  ;;  %s683_s29 = sand.u32 (!%p621_p3), 1, %s556_s10  }
  0x27   : > { %s354_s4 = sshll.u32 (!%p621_p3), %s683_s29, 3  ;;  %s148_s5 = scalar_lea.sflag (!%p621_p3), [#allocation3], %s683_s29 }
  0x28   : > { %s151_s6 = scalar_lea.vmem (!%p621_p3), [#allocation2], %s354_s4 }
  0x2b   : > { %539 = dma.done.wait (%p648_p12), %s148_s5, 128  }
  0x2c   : > { %541 = vsyncadd (%p648_p12), %s148_s5, 4294967168 }
  0x2d   : > { %543 = dma.done.wait (%p40_p1), [#allocation6], 512  }
  0x2e   : > { %545 = vsyncadd (%p40_p1), [#allocation6], 4294966784  ;;  %v569_v0 = vmov 2   ;;  %v570_v1 = vmov 0   ;;  %v178_v2 = vld [vmem:[%s151_s6] sm:$0xff]  ;;  %v571_v3 = vmov 1  }
  0x2f   : > { %431 = vset.pattern.permute.xlu1 %v569_v0  ;;  %429 = vset.pattern.permute.xlu0 %v570_v1  ;;  %v572_v4 = vmov 3   ;;  %s573_s17 = smov 12   ;;  %s574_s27 = smov 124   ;;  %v225_v13 = vld [vmem:[#allocation5 + $0x18] sm:$0xff]  ;;  %v224_v14 = vld [vmem:[#allocation5 + $0x10] sm:$0xff]  ;;  %v223_v15 = vld [vmem:[#allocation5 + $0x8] sm:$0xff] }
  0x30   : > { %191 = vperm.xlu1 %431, %v178_v2   ;;  %181 = vperm.xlu0 %429, %v178_v2   ;;  %s575_s7 = smov 4   ;;  %s576_s8 = smov 20   ;;  %v222_v16 = vld [vmem:[#allocation5] sm:$0xff]  ;;  %vm216_vm0 = vcmask 64512   ;;  %vm218_vm1 = vcmask 130048   ;;  %vm220_vm2 = vcmask 195584  }
  0x31   : > { %242 = vmatpush.msra.mxu0 %v225_v13  ;;  %vm226_vm3 = vcmask 261120   ;;  %s359_s13 = sshll.u32 %s616_s16, 3  ;;  %s177_s19 = scalar_lea.vmem [#allocation7], %s354_s4 }
  0x32   : > { %s262_s18 = scalar_lea.hbm %s734_s2, %s359_s13  ;;  %s264_s20 = sshll.u32 %s177_s19, 4  ;;  %s265_s20 = int_to_ptr.vmem [resolvable:$true] %s264_s20 }
  0x33   : > { %243 = vmatpush.msra.mxu0 %v224_v14  ;;  %s266_s21 = sshll.u32 %s262_s18, 4  ;;  %s252_s22 = scalar_lea.sflag [#allocation4], %s683_s29  ;;  %s267_s21 = int_to_ptr.hbm [resolvable:$true] %s266_s21 }
  0x34   : > { %s508_s24 = sshra.s32 %s267_s21, 4  ;;  %s514_s5 = scalar_lea.hbm %s734_s2, 16  ;;  %s509_s24 = int_to_ptr.hbm [resolvable:$true] %s508_s24 }
  0x35   : > { %244 = vmatpush.msra.mxu0 %v223_v15  ;;  %s510_s25 = scalar_lea.hbm %s509_s24, 8  ;;  %p515_p12 = scmp.lt.s32.totalorder %s509_s24, %s734_s2 }
  0x36   : > { %p511_p1 = scmp.ne.s32.totalorder %s509_s24, %s510_s25  ;;  %p516_p8 = scmp.lt.s32.totalorder %s514_s5, %s510_s25 }
  0x37   : > { %245 = vmatpush.msra.mxu0 %v222_v16 }
  0x38   : > { %430 = vset.pattern.permute.xlu0 %v571_v3  ;;  %432 = vset.pattern.permute.xlu1 %v572_v4  ;;  %p512_p3 = pnand %p511_p1, %p652_p13  ;;  %p517_p7 = por %p516_p8, %p515_p12 }
  0x39   : > { %186 = vperm.xlu0 %430, %v178_v2   ;;  %196 = vperm.xlu1 %432, %v178_v2  }
  0x3a   : > { %p513_p5 = pneg %p512_p3 }
  0x3c   : > { %p518_p9 = pnand %p517_p7, %p513_p5 }
  0x41   : > { %433 = vset.pattern.permute.xlu0 %v572_v4 }
  0xa2   : > { %v192_v5 = vpop.permute.xlu1 %191  ;;  %v182_v6 = vpop.permute.xlu0 %181 }
  0xa3   : > { %v194_v7 = vmul.f32 %v192_v5, %v178_v2  ;;  %v184_v8 = vmul.f32 %v182_v6, %v178_v2 }
  0xa5   : > { %209 = vrot.lane.b32.xlu1 %v194_v7, %s573_s17  ;;  %201 = vrot.lane.b32.xlu2 %v184_v8, %s574_s27 }
  0xab   : > { %v187_v9 = vpop.permute.xlu0 %186  ;;  %v197_v11 = vpop.permute.xlu1 %196 }
  0xac   : > { %v189_v10 = vmul.f32 %v187_v9, %v178_v2  ;;  %v199_v12 = vmul.f32 %v197_v11, %v178_v2 }
  0xae   : > { %205 = vrot.lane.b32.xlu2 %v189_v10, %s575_s7 }
  0xb6   : > { %213 = vrot.lane.b32.xlu2 %v199_v12, %s576_s8 }
  0xff   : > { %v202_v17 = vpop.permute.xlu2 %201 }
 0x108   : > { %v206_v18 = vpop.permute.xlu2 %205 }
 0x109   : > { %v217_v20 = vsel %vm216_vm0, %v202_v17, %v206_v18 }
 0x110   : > { %v214_v19 = vpop.permute.xlu2 %213 }
 0x117   : > { %v210_v21 = vpop.permute.xlu1 %209 }
 0x118   : > { %v219_v22 = vsel %vm218_vm1, %v217_v20, %v210_v21 }
 0x119   : > { %v221_v23 = vsel %vm220_vm2, %v219_v22, %v214_v19 }
 0x11a   : > { %357 = vmatmul.msk.f32.vlgmr.msra.gmra.mxu0 %vm226_vm3, %v221_v23 }
 0x197   : > { %v247_v24 = vpop.f32.mrf.mxu0 }
 0x198   : > { %250 = vst.msk [vmem:[%s177_s19] sm:$0xff] %vm226_vm3, %v247_v24 }
 0x199   : > { %521 = shalt.err (!%p518_p9)
}
 0x19a   : > { %368 = dma.vmem_to_hbm [thread:$0]  (%p652_p13), %s265_s20, 128, %s267_s21, %s252_s22  }
 0x19b PF: > { %s278_s29 = sand.u32 1, %s552_s9   ;;  %p740_p10 = scmp.ge.s32.totalorder %s564_s12, 2 }
 0x19c   : > { %s279_s17 = scalar_lea.sflag [#allocation4], %s278_s29 }
 0x19d   : > { %p379_p11 = pnand %p740_p10, %p657_p4 }
 0x19f   : > { %p380_p0 = pneg %p379_p11 }
 0x1a1   : > { %547 = dma.done.wait (%p380_p0), %s279_s17, 128  }
 0x1a2   : > { %549 = vsyncadd (%p380_p0), %s279_s17, 4294967168  ;;  %p16_p2 = scmp.ge.s32.totalorder %s632_s23, 4   ;;  %s741_s9 = smov %s556_s10 }
 0x1a3   : > { %s742_s10 = smov %s560_s11  ;;  %s743_s11 = smov %s644_s26 }
 0x1a4   : > { %s744_s12 = smov %s632_s23  ;;  %18 = sbr.rel (!%p16_p2) target bundleno = 6 (0x6), region = 77 }
 0x1a9   :  { %285 = vsyncpa [#allocation3], 1 }
 0x1aa   :  { %287 = vsyncpa [#allocation3 + $0x1], 1 }
 0x1ab   :  { %288 = vsyncpa [#allocation6], 1 }
 0x1ac   :  { %289 = vsyncpa [#allocation4], 1 }
 0x1ad   :  { %291 = vsyncpa [#allocation4 + $0x1], 1 }

</bundles_post_ra>
